<compile_context>
chip_gen: v7x
topology: tpu7x:2x2x1
jax: 0.10.0
libtpu: 0.0.40
codegen_flags: <defaults>
</compile_context>

<pallas_src>
import jax
import jax.numpy as jnp
from jax.experimental import pallas as pl
from jax.experimental.pallas import tpu as pltpu

LANE = 128   # vreg lane width
ROW = 16     # row-tile granularity (covers bf16 (16,128) sublane packing; ok for f32)


def _round_up(x, m):
    return (x + m - 1) // m * m


def _pad2d(a, rows, cols, fill=0.0):
    r, c = a.shape
    return jnp.pad(a, ((0, rows - r), (0, cols - c)), constant_values=fill)


def hand_mlp_kernel(x_ref, w1_ref, b1_ref, w2_ref, b2_ref, w3_ref, b3_ref, o_ref):
    x = x_ref[...]                                            # [tile_b, n_in] (MXU dtype)

    # fc1 + ReLU (hidden dim lane-padded to 128; padded weight columns are 0).
    h1 = jnp.dot(x, w1_ref[...], preferred_element_type=jnp.float32) + b1_ref[...]
    h1 = jnp.maximum(h1, 0.0)

    # TODO(synk): dropout (p=0.2 / p=0.4) is identity in eval mode; training-mode
    # stochastic masking is not implemented here.

    # fc2 + ReLU.
    h2 = jnp.dot(h1.astype(w2_ref.dtype), w2_ref[...],
                 preferred_element_type=jnp.float32) + b2_ref[...]
    h2 = jnp.maximum(h2, 0.0)

    # fc3 — padded output columns carry a -1e30 f32 bias so softmax ignores them.
    logits = jnp.dot(h2.astype(w3_ref.dtype), w3_ref[...],
                     preferred_element_type=jnp.float32) + b3_ref[...]

    # softmax over dim=1 in f32; exact divide so rows sum to 1.
    m = jnp.max(logits, axis=-1, keepdims=True)
    e = jnp.exp(logits - m)
    denom = jnp.sum(e, axis=-1, keepdims=True)
    probs = e / denom

    # Store only the real classes -> narrow (tile_b, n_out) output, no padded slab.
    n_out = o_ref.shape[-1]
    o_ref[...] = probs[:, :n_out].astype(o_ref.dtype)


def hand_mlp_forward(x, params, *, tile_b=2048, mxu_dtype=jnp.bfloat16):
    """Fused Hand_MLP forward.

    x: [B, n_in] float. params: (w1, b1, w2, b2, w3, b3) with weights stored as
    [in, out] (transposed vs. torch.nn.Linear) so the kernel computes x @ W + b.
    Returns softmax probabilities, shape [B, n_out], float32.
    """
    w1, b1, w2, b2, w3, b3 = params
    B, n_in = x.shape
    n_hid = w1.shape[1]
    n_mid = w2.shape[1]          # 10 in the reference module
    n_out = w3.shape[1]

    hid_pad = _round_up(n_hid, LANE)
    mid_pad = _round_up(n_mid, LANE)
    out_pad = _round_up(n_out, LANE)

    # Lane-dense padded parameters. MXU operands may be bf16; biases stay f32
    # (added after the f32 accumulation). The -1e30 pad-column mask on b3 must
    # stay f32 — do NOT cast it to mxu_dtype.
    w1_p = _pad2d(w1, n_in, hid_pad).astype(mxu_dtype)
    b1_p = _pad2d(b1.reshape(1, -1), 1, hid_pad).astype(jnp.float32)
    w2_p = _pad2d(w2, hid_pad, mid_pad).astype(mxu_dtype)
    b2_p = _pad2d(b2.reshape(1, -1), 1, mid_pad).astype(jnp.float32)
    w3_p = _pad2d(w3, mid_pad, out_pad).astype(mxu_dtype)
    b3_p = _pad2d(b3.reshape(1, -1), 1, out_pad, fill=-1e30).astype(jnp.float32)
    assert b3_p.dtype == jnp.float32

    # Stream activations in the MXU dtype (halves the dominant x HBM term).
    x_s = x.astype(mxu_dtype)

    # Row tiling: no wrapper-side pad; Pallas clips the partial last block.
    b_rounded = _round_up(max(B, 1), ROW)
    tile_b = max(ROW, min(_round_up(tile_b, ROW), b_rounded))
    # v7x has 2 TensorCores: ensure >=2 grid steps for medium/large batches so
    # the "parallel" axis actually shards; tiny batches keep a single step.
    if b_rounded > 1024 and tile_b >= b_rounded:
        tile_b = _round_up((b_rounded + 1) // 2, ROW)
    grid = (pl.cdiv(B, tile_b),)

    const = lambda i: (0, 0)   # weights/biases: constant index map -> VMEM-resident

    out = pl.pallas_call(
        hand_mlp_kernel,
        out_shape=jax.ShapeDtypeStruct((B, n_out), jnp.float32),
        grid=grid,
        in_specs=[
            pl.BlockSpec((tile_b, n_in), lambda i: (i, 0)),   # streamed activations
            pl.BlockSpec((n_in, hid_pad), const),
            pl.BlockSpec((1, hid_pad), const),
            pl.BlockSpec((hid_pad, mid_pad), const),
            pl.BlockSpec((1, mid_pad), const),
            pl.BlockSpec((mid_pad, out_pad), const),
            pl.BlockSpec((1, out_pad), const),
        ],
        out_specs=pl.BlockSpec((tile_b, n_out), lambda i: (i, 0)),
        compiler_params=pltpu.CompilerParams(
            dimension_semantics=("parallel",)),
    )(x_s, w1_p, b1_p, w2_p, b2_p, w3_p, b3_p)

    return out


def init_params(key, n_in, n_hid, n_out):
    """Matches Hand_MLP.__init__ shapes.

    Linear weights: xavier_normal_ (std = sqrt(2/(fan_in+fan_out))).
    Linear biases:  PyTorch default U(-1/sqrt(fan_in), 1/sqrt(fan_in)).
    Weights stored transposed as [in, out] so the kernel computes y = x @ W + b.
    """
    ks = jax.random.split(key, 6)

    def xavier(k, fan_in, fan_out):
        std = (2.0 / (fan_in + fan_out)) ** 0.5
        return std * jax.random.normal(k, (fan_in, fan_out), dtype=jnp.float32)

    def bias(k, fan_in, fan_out):
        bound = 1.0 / (fan_in ** 0.5)
        return jax.random.uniform(k, (1, fan_out), dtype=jnp.float32,
                                  minval=-bound, maxval=bound)

    w1 = xavier(ks[0], n_in, n_hid)
    b1 = bias(ks[1], n_in, n_hid)
    w2 = xavier(ks[2], n_hid, 10)
    b2 = bias(ks[3], n_hid, 10)
    w3 = xavier(ks[4], 10, n_out)
    b3 = bias(ks[5], 10, n_out)
    return (w1, b1, w2, b2, w3, b3)


def hand_mlp_ref(x, params, mxu_dtype=jnp.float32):
    """Pure-JAX reference (optionally with the kernel's MXU-input dtype)."""
    w1, b1, w2, b2, w3, b3 = params

    def mm(a, w):
        return jnp.dot(a.astype(mxu_dtype), w.astype(mxu_dtype),
                       preferred_element_type=jnp.float32)

    h1 = jnp.maximum(mm(x, w1) + b1, 0.0)
    h2 = jnp.maximum(mm(h1, w2) + b2, 0.0)
    logits = mm(h2, w3) + b3
    return jax.nn.softmax(logits, axis=1)


if __name__ == "__main__":
    # Small shapes consistent with the module: n_in landmark features -> n_hid
    # hidden -> 10 -> n_out gesture classes.
    B, n_in, n_hid, n_out = 8, 64, 32, 4

    key = jax.random.PRNGKey(0)
    k_x, k_p = jax.random.split(key)
    x = jax.random.normal(k_x, (B, n_in), dtype=jnp.float32)
    params = init_params(k_p, n_in, n_hid, n_out)

    out = hand_mlp_forward(x, params)
    out = jax.block_until_ready(out)

    assert out.shape == (B, n_out)
    assert bool(jnp.all(jnp.isfinite(out)))
    # Exact softmax divide -> rows sum to 1 at f32 precision.
    assert jnp.allclose(jnp.sum(out, axis=1), 1.0, atol=1e-4)
    # Matched-precision reference (bf16 MXU inputs, f32 accumulation).
    ref_matched = hand_mlp_ref(x, params, mxu_dtype=jnp.bfloat16)
    assert jnp.allclose(out, ref_matched, atol=2e-3, rtol=2e-3)
    # Full-f32 reference: looser tolerance absorbs the bf16 MXU-input rounding.
    ref_f32 = hand_mlp_ref(x, params, mxu_dtype=jnp.float32)
    assert jnp.allclose(out, ref_f32, atol=5e-2, rtol=5e-2)

    print("KERNEL_OK")
</pallas_src>

<mosaic_0001>
module attributes {stable_mosaic.version = 11 : i64} {
  func.func @hand_mlp_kernel(%arg0: i32, %arg1: memref<16x64xbf16, #tpu.memory_space<vmem>>, %arg2: memref<64x128xbf16, #tpu.memory_space<vmem>>, %arg3: memref<1x128xf32, #tpu.memory_space<vmem>>, %arg4: memref<128x128xbf16, #tpu.memory_space<vmem>>, %arg5: memref<1x128xf32, #tpu.memory_space<vmem>>, %arg6: memref<128x128xbf16, #tpu.memory_space<vmem>>, %arg7: memref<1x128xf32, #tpu.memory_space<vmem>>, %arg8: memref<16x4xf32, #tpu.memory_space<vmem>>) attributes {dimension_semantics = [#tpu.dimension_semantics<parallel>], iteration_bounds = array<i64: 1>, scalar_prefetch = 0 : i64, scratch_operands = 0 : i64, tpu.core_type = #tpu.core_type<tc>, window_params = [{transform_indices = @transform_0, window_bounds = array<i64: 16, 64>}, {pipeline_mode = #tpu.pipeline_mode<synchronous>, transform_indices = @transform_1, window_bounds = array<i64: 64, 128>}, {pipeline_mode = #tpu.pipeline_mode<synchronous>, transform_indices = @transform_2, window_bounds = array<i64: 1, 128>}, {pipeline_mode = #tpu.pipeline_mode<synchronous>, transform_indices = @transform_3, window_bounds = array<i64: 128, 128>}, {pipeline_mode = #tpu.pipeline_mode<synchronous>, transform_indices = @transform_4, window_bounds = array<i64: 1, 128>}, {pipeline_mode = #tpu.pipeline_mode<synchronous>, transform_indices = @transform_5, window_bounds = array<i64: 128, 128>}, {pipeline_mode = #tpu.pipeline_mode<synchronous>, transform_indices = @transform_6, window_bounds = array<i64: 1, 128>}, {transform_indices = @transform_7, window_bounds = array<i64: 16, 4>}]} {
    %c0 = arith.constant 0 : index
    %c0_0 = arith.constant 0 : index
    %0 = vector.load %arg1[%c0, %c0_0] : memref<16x64xbf16, #tpu.memory_space<vmem>>, vector<16x64xbf16>
    %c0_1 = arith.constant 0 : index
    %c0_2 = arith.constant 0 : index
    %1 = vector.load %arg2[%c0_1, %c0_2] : memref<64x128xbf16, #tpu.memory_space<vmem>>, vector<64x128xbf16>
    %cst = arith.constant dense<0.000000e+00> : vector<16x128xf32>
    %2 = tpu.matmul %0, %1, %cst {dimension_numbers = #tpu.dot_dimension_numbers<[1], [0], [0], [1], [0, 0, 1, 1], [], []>} : vector<16x64xbf16>, vector<64x128xbf16>, vector<16x128xf32> -> vector<16x128xf32>
    %c0_3 = arith.constant 0 : index
    %c0_4 = arith.constant 0 : index
    %3 = vector.load %arg3[%c0_3, %c0_4] : memref<1x128xf32, #tpu.memory_space<vmem>>, vector<1x128xf32>
    %4 = vector.broadcast %3 : vector<1x128xf32> to vector<16x128xf32>
    %5 = arith.addf %2, %4 : vector<16x128xf32>
    %cst_5 = arith.constant 0.000000e+00 : f32
    %6 = vector.broadcast %cst_5 : f32 to vector<16x128xf32>
    %7 = arith.maximumf %5, %6 : vector<16x128xf32>
    %8 = arith.truncf %7 : vector<16x128xf32> to vector<16x128xbf16>
    %c0_6 = arith.constant 0 : index
    %c0_7 = arith.constant 0 : index
    %9 = vector.load %arg4[%c0_6, %c0_7] : memref<128x128xbf16, #tpu.memory_space<vmem>>, vector<128x128xbf16>
    %cst_8 = arith.constant dense<0.000000e+00> : vector<16x128xf32>
    %10 = tpu.matmul %8, %9, %cst_8 {dimension_numbers = #tpu.dot_dimension_numbers<[1], [0], [0], [1], [0, 0, 1, 1], [], []>} : vector<16x128xbf16>, vector<128x128xbf16>, vector<16x128xf32> -> vector<16x128xf32>
    %c0_9 = arith.constant 0 : index
    %c0_10 = arith.constant 0 : index
    %11 = vector.load %arg5[%c0_9, %c0_10] : memref<1x128xf32, #tpu.memory_space<vmem>>, vector<1x128xf32>
    %12 = vector.broadcast %11 : vector<1x128xf32> to vector<16x128xf32>
    %13 = arith.addf %10, %12 : vector<16x128xf32>
    %cst_11 = arith.constant 0.000000e+00 : f32
    %14 = vector.broadcast %cst_11 : f32 to vector<16x128xf32>
    %15 = arith.maximumf %13, %14 : vector<16x128xf32>
    %16 = arith.truncf %15 : vector<16x128xf32> to vector<16x128xbf16>
    %c0_12 = arith.constant 0 : index
    %c0_13 = arith.constant 0 : index
    %17 = vector.load %arg6[%c0_12, %c0_13] : memref<128x128xbf16, #tpu.memory_space<vmem>>, vector<128x128xbf16>
    %cst_14 = arith.constant dense<0.000000e+00> : vector<16x128xf32>
    %18 = tpu.matmul %16, %17, %cst_14 {dimension_numbers = #tpu.dot_dimension_numbers<[1], [0], [0], [1], [0, 0, 1, 1], [], []>} : vector<16x128xbf16>, vector<128x128xbf16>, vector<16x128xf32> -> vector<16x128xf32>
    %c0_15 = arith.constant 0 : index
    %c0_16 = arith.constant 0 : index
    %19 = vector.load %arg7[%c0_15, %c0_16] : memref<1x128xf32, #tpu.memory_space<vmem>>, vector<1x128xf32>
    %20 = vector.broadcast %19 : vector<1x128xf32> to vector<16x128xf32>
    %21 = arith.addf %18, %20 : vector<16x128xf32>
    %cst_17 = arith.constant dense<0xFF800000> : vector<16xf32>
    %22 = vector.multi_reduction <maximumf>, %21, %cst_17 [1] : vector<16x128xf32> to vector<16xf32>
    %23 = vector.shape_cast %22 : vector<16xf32> to vector<16x1xf32>
    %24 = vector.broadcast %23 : vector<16x1xf32> to vector<16x128xf32>
    %25 = arith.subf %21, %24 : vector<16x128xf32>
    %26 = math.exp %25 : vector<16x128xf32>
    %cst_18 = arith.constant dense<0.000000e+00> : vector<16xf32>
    %27 = vector.multi_reduction <add>, %26, %cst_18 [1] : vector<16x128xf32> to vector<16xf32>
    %28 = vector.shape_cast %27 : vector<16xf32> to vector<16x1xf32>
    %29 = vector.broadcast %28 : vector<16x1xf32> to vector<16x128xf32>
    %30 = arith.divf %26, %29 : vector<16x128xf32>
    %31 = vector.extract_strided_slice %30 {offsets = [0, 0], sizes = [16, 4], strides = [1, 1]} : vector<16x128xf32> to vector<16x4xf32>
    %c0_19 = arith.constant 0 : index
    %c0_20 = arith.constant 0 : index
    %32 = vector.load %arg8[%c0_19, %c0_20] : memref<16x4xf32, #tpu.memory_space<vmem>>, vector<16x4xf32>
    tpu.vector_store %arg8[%c0_19, %c0_20], %31 {strides = array<i32>} : memref<16x4xf32, #tpu.memory_space<vmem>>, vector<16x4xf32>,
    return
  }
  func.func @transform_0(%arg0: i32) -> (i32, i32) {
    %c0_i32 = arith.constant 0 : i32
    %c0_i32_0 = arith.constant 0 : i32
    return %arg0, %c0_i32 : i32, i32
  }
  func.func @transform_1(%arg0: i32) -> (i32, i32) {
    %c0_i32 = arith.constant 0 : i32
    %c0_i32_0 = arith.constant 0 : i32
    %c0_i32_1 = arith.constant 0 : i32
    return %c0_i32, %c0_i32_0 : i32, i32
  }
  func.func @transform_2(%arg0: i32) -> (i32, i32) {
    %c0_i32 = arith.constant 0 : i32
    %c0_i32_0 = arith.constant 0 : i32
    %c0_i32_1 = arith.constant 0 : i32
    return %c0_i32, %c0_i32_0 : i32, i32
  }
  func.func @transform_3(%arg0: i32) -> (i32, i32) {
    %c0_i32 = arith.constant 0 : i32
    %c0_i32_0 = arith.constant 0 : i32
    %c0_i32_1 = arith.constant 0 : i32
    return %c0_i32, %c0_i32_0 : i32, i32
  }
  func.func @transform_4(%arg0: i32) -> (i32, i32) {
    %c0_i32 = arith.constant 0 : i32
    %c0_i32_0 = arith.constant 0 : i32
    %c0_i32_1 = arith.constant 0 : i32
    return %c0_i32, %c0_i32_0 : i32, i32
  }
  func.func @transform_5(%arg0: i32) -> (i32, i32) {
    %c0_i32 = arith.constant 0 : i32
    %c0_i32_0 = arith.constant 0 : i32
    %c0_i32_1 = arith.constant 0 : i32
    return %c0_i32, %c0_i32_0 : i32, i32
  }
  func.func @transform_6(%arg0: i32) -> (i32, i32) {
    %c0_i32 = arith.constant 0 : i32
    %c0_i32_0 = arith.constant 0 : i32
    %c0_i32_1 = arith.constant 0 : i32
    return %c0_i32, %c0_i32_0 : i32, i32
  }
  func.func @transform_7(%arg0: i32) -> (i32, i32) {
    %c0_i32 = arith.constant 0 : i32
    %c0_i32_0 = arith.constant 0 : i32
    return %arg0, %c0_i32 : i32, i32
  }
}

</mosaic_0001>

<bundles_post_ra>
// kernel: tpu_custom_call.1
= control target key start
LH: loop header
LB: loop body
LE: loop exit
PB: predicated region body
PF: predicated region fallthrough
CT: control target
= control target key end

     0   :  { %12 = vsyncpa [#allocation3], 0  ;;  %s859_s0 = inlined_call_operand.hbm [shape: bf16[8,64], index: 0, kind: input, shape index: {}]   ;;  %s860_s1 = inlined_call_operand.hbm [shape: bf16[64,128], index: 1, kind: input, shape index: {}]   ;;  %s861_s2 = inlined_call_operand.vmem [shape: f32[1,128], index: 2, kind: input, shape index: {}]   ;;  %s862_s3 = inlined_call_operand.hbm [shape: bf16[128,128], index: 3, kind: input, shape index: {}]   ;;  %s863_s4 = inlined_call_operand.vmem [shape: f32[1,128], index: 4, kind: input, shape index: {}]   ;;  %s864_s5 = inlined_call_operand.hbm [shape: bf16[128,128], index: 5, kind: input, shape index: {}]   ;;  %s865_s6 = inlined_call_operand.vmem [shape: f32[1,128], index: 6, kind: input, shape index: {}]   ;;  %s866_s7 = inlined_call_operand.vmem [shape: f32[8,4], index: 7, kind: output, shape index: {}]  }
   0x1   :  { %13 = vsyncpa [#allocation5], 0 }
   0x2   :  { %14 = vsyncpa [#allocation8], 0 }
   0x3   :  { %19 = vsyncadd [#allocation3], 64  ;;  %s698_s24 = smov [#allocation4]   ;;  %s699_s26 = smov [#allocation2]  }
   0x4   :  { %s32_s25 = sshll.u32 %s698_s24, 4  ;;  %s20_s27 = sshll.u32 %s699_s26, 4  ;;  %s33_s25 = int_to_ptr.vmem [resolvable:$true] %s32_s25  ;;  %s746_s27 = int_to_ptr.vmem [resolvable:$true] %s20_s27 }
   0x5   :  { %s604_s30 = scalar_lea.hbm %s860_s1, 512 }
   0x6   :  { %p605_p0 = scmp.ne.s32.totalorder %s860_s1, %s604_s30  ;;  %p608_p1 = scmp.lt.u32.totalorder %s604_s30, %s860_s1 }
   0x8   :  { %p610_p2 = pnand %p608_p1, %p605_p0 }
   0xa   :  { %613 = shalt.err (!%p610_p2)
}
   0xb   :  { %s614_s12 = scalar_lea.vmem %s33_s25, 512  ;;  %p619_p4 = scmp.lt.s32.totalorder %s33_s25, %s33_s25 }
   0xc   :  { %p615_p3 = scmp.ne.s32.totalorder %s33_s25, %s614_s12  ;;  %p620_p5 = scmp.lt.s32.totalorder %s614_s12, %s614_s12 }
   0xe   :  { %p621_p6 = por %p620_p5, %p619_p4 }
  0x10   :  { %p622_p7 = pnand %p621_p6, %p615_p3 }
  0x12   :  { %625 = shalt.err (!%p622_p7)
}
  0x13   :  { %s700_s13 = smov 64   ;;  %s701_s14 = smov 4  }
  0x14   :  { %38 = dma.hbm_to_vmem [thread:$0]  %s860_s1, 512, %s33_s25, [#allocation5], %s700_s13, %s700_s13, %s701_s14  }
  0x15   :  { %s626_s19 = scalar_lea.hbm %s859_s0, 64 }
  0x16   :  { %p627_p8 = scmp.ne.s32.totalorder %s859_s0, %s626_s19  ;;  %p630_p9 = scmp.lt.u32.totalorder %s626_s19, %s859_s0 }
  0x18   :  { %p632_p10 = pnand %p630_p9, %p627_p8 }
  0x1a   :  { %635 = shalt.err (!%p632_p10)
}
  0x1b   :  { %s636_s24 = scalar_lea.vmem %s746_s27, 64  ;;  %s640_s1 = scalar_lea.vmem %s746_s27, 128 }
  0x1c   :  { %p637_p11 = scmp.ne.s32.totalorder %s746_s27, %s636_s24  ;;  %p641_p12 = scmp.lt.s32.totalorder %s746_s27, %s746_s27 }
  0x1d   :  { %p642_p13 = scmp.lt.s32.totalorder %s640_s1, %s636_s24 }
  0x1f   :  { %p643_p0 = por %p642_p13, %p641_p12 }
  0x21   :  { %p644_p1 = pnand %p643_p0, %p637_p11 }
  0x23   :  { %647 = shalt.err (!%p644_p1)
}
  0x24   :  { %26 = dma.hbm_to_vmem [thread:$0]  %s859_s0, 64, %s746_s27, [#allocation3], %s700_s13, %s700_s13, %s701_s14  }
  0x25   :  { %s702_s28 = smov [#allocation6]   ;;  %s703_s30 = smov [#allocation7]  }
  0x26   :  { %s46_s29 = sshll.u32 %s702_s28, 4  ;;  %s60_s8 = sshll.u32 %s703_s30, 4  ;;  %s47_s29 = int_to_ptr.vmem [resolvable:$true] %s46_s29  ;;  %s784_s8 = int_to_ptr.vmem [resolvable:$true] %s60_s8 }
  0x27   :  { %s648_s11 = scalar_lea.hbm %s862_s3, 1024 }
  0x28   :  { %p649_p2 = scmp.ne.s32.totalorder %s862_s3, %s648_s11  ;;  %p652_p3 = scmp.lt.u32.totalorder %s648_s11, %s862_s3 }
  0x2a   :  { %p654_p4 = pnand %p652_p3, %p649_p2 }
  0x2c   :  { %657 = shalt.err (!%p654_p4)
}
  0x2d   :  { %s658_s0 = scalar_lea.vmem %s47_s29, 1024  ;;  %p663_p6 = scmp.lt.s32.totalorder %s47_s29, %s47_s29 }
  0x2e   :  { %p659_p5 = scmp.ne.s32.totalorder %s47_s29, %s658_s0  ;;  %p664_p7 = scmp.lt.s32.totalorder %s658_s0, %s658_s0 }
  0x30   :  { %p665_p8 = por %p664_p7, %p663_p6 }
  0x32   :  { %p666_p9 = pnand %p665_p8, %p659_p5 }
  0x34   :  { %669 = shalt.err (!%p666_p9)
}
  0x35   :  { %52 = dma.hbm_to_vmem [thread:$0]  %s862_s3, 1024, %s47_s29, [#allocation5], %s700_s13, %s700_s13, %s701_s14  }
  0x36   :  { %s670_s21 = scalar_lea.hbm %s864_s5, 1024 }
  0x37   :  { %p671_p10 = scmp.ne.s32.totalorder %s864_s5, %s670_s21  ;;  %p674_p11 = scmp.lt.u32.totalorder %s670_s21, %s864_s5 }
  0x39   :  { %p676_p12 = pnand %p674_p11, %p671_p10 }
  0x3b   :  { %679 = shalt.err (!%p676_p12)
}
  0x3c   :  { %s680_s25 = scalar_lea.vmem %s784_s8, 1024  ;;  %p685_p0 = scmp.lt.s32.totalorder %s784_s8, %s784_s8 }
  0x3d   :  { %p681_p13 = scmp.ne.s32.totalorder %s784_s8, %s680_s25  ;;  %p686_p1 = scmp.lt.s32.totalorder %s680_s25, %s680_s25 }
  0x3f   :  { %p687_p2 = por %p686_p1, %p685_p0 }
  0x41   :  { %p688_p3 = pnand %p687_p2, %p681_p13 }
  0x43   :  { %691 = shalt.err (!%p688_p3)
}
  0x44   :  { %66 = dma.hbm_to_vmem [thread:$0]  %s864_s5, 1024, %s784_s8, [#allocation8], %s700_s13, %s700_s13, %s701_s14  }
  0x45   :  { %692 = dma.done.wait [#allocation3], 128  }
  0x46   :  { %693 = vsyncadd [#allocation3], 4294967168 }
  0x47   :  { %694 = dma.done.wait [#allocation5], 1536  }
  0x48   :  { %695 = vsyncadd [#allocation5], 4294965760 }
  0x49   :  { %696 = dma.done.wait [#allocation8], 1024  }
  0x4a   :  { %697 = vsyncadd [#allocation8], 4294966272  ;;  %v704_v0 = vmov 0.0   ;;  %vm705_vm0 = vmmov 0   ;;  %v575_v1 = vld [vmem:[#allocation4] sm:$0xff]   ;;  %v576_v2 = vld [vmem:[#allocation4 + $0x8] sm:$0xff]  }
  0x4b   :  { %515 = vmatprep.subr.bf16.mxu0 %v704_v0  ;;  %523 = vmatprep.mubr.msk.bf16.mxu0 %vm705_vm0, %v704_v0  ;;  %v580_v3 = vld [vmem:[#allocation6] sm:$0xff]   ;;  %v577_v4 = vld [vmem:[#allocation4 + $0x10] sm:$0xff]   ;;  %v581_v5 = vld [vmem:[#allocation6 + $0x8] sm:$0xff]   ;;  %vm128_vm1 = vcmask 523264   ;;  %vm421_vm2 = vcmask 31744  }
  0x4c   :  { %527 = vmatprep.subr.bf16.mxu1 %v704_v0  ;;  %543 = vmatprep.mubr.msk.bf16.mxu1 %vm705_vm0, %v704_v0  ;;  %v578_v6 = vld [vmem:[#allocation4 + $0x18] sm:$0xff]   ;;  %v582_v8 = vld [vmem:[#allocation6 + $0x10] sm:$0xff]   ;;  %v584_v10 = vld [vmem:[#allocation6 + $0x20] sm:$0xff]  }
  0x4d   :  { %516 = vmatpush3.bf16.msra.mxu0 %v575_v1  ;;  %528 = vmatpush3.bf16.msra.mxu1 %v580_v3  ;;  %v579_v7 = vld [vmem:[#allocation2] sm:$0xff]   ;;  %v585_v11 = vld [vmem:[#allocation6 + $0x28] sm:$0xff]   ;;  %v586_v12 = vld [vmem:[#allocation6 + $0x30] sm:$0xff]  }
  0x4e   :  { %517 = vmatprep.subr.bf16.mxu0 %v704_v0  ;;  %529 = vmatprep.subr.bf16.mxu1 %v704_v0  ;;  %v583_v9 = vld [vmem:[#allocation6 + $0x18] sm:$0xff]   ;;  %v588_v14 = vld [vmem:[#allocation7] sm:$0xff]   ;;  %v589_v15 = vld [vmem:[#allocation7 + $0x8] sm:$0xff]  }
  0x4f   :  { %v587_v13 = vld [vmem:[#allocation6 + $0x38] sm:$0xff]   ;;  %v590_v16 = vld [vmem:[#allocation7 + $0x10] sm:$0xff]   ;;  %v592_v18 = vld [vmem:[#allocation7 + $0x20] sm:$0xff]  }
  0x50   :  { %v591_v17 = vld [vmem:[#allocation7 + $0x18] sm:$0xff]   ;;  %v593_v19 = vld [vmem:[#allocation7 + $0x28] sm:$0xff]   ;;  %v594_v30 = vld [vmem:[#allocation7 + $0x30] sm:$0xff]  }
  0x51   :  { %518 = vmatpush3.bf16.msra.mxu0 %v576_v2  ;;  %530 = vmatpush3.bf16.msra.mxu1 %v581_v5  ;;  %v467_v20 = vld [vmem:[%s861_s2] ss:$0 sm:$0xff] }
  0x52   :  { %519 = vmatprep.subr.bf16.mxu0 %v704_v0  ;;  %531 = vmatprep.subr.bf16.mxu1 %v704_v0  ;;  %v595_v31 = vld [vmem:[#allocation7 + $0x38] sm:$0xff]  }
  0x53   :  { %v474_v32 = vld [vmem:[%s863_s4] ss:$0 sm:$0xff] }
  0x54   :  { %v483_v42 = vld [vmem:[%s865_s6] ss:$0 sm:$0xff] }
  0x55   :  { %520 = vmatpush3.bf16.msra.mxu0 %v577_v4  ;;  %532 = vmatpush3.bf16.msra.mxu1 %v582_v8 }
  0x56   :  { %521 = vmatprep.subr.bf16.mxu0 %v704_v0  ;;  %533 = vmatprep.subr.bf16.mxu1 %v704_v0 }
  0x59   :  { %522 = vmatpush3.bf16.msra.mxu0 %v578_v6  ;;  %534 = vmatpush3.bf16.msra.mxu1 %v583_v9 }
  0x5a   :  { %547 = vmatprep.subr.bf16.mxu0 %v704_v0  ;;  %535 = vmatprep.subr.bf16.mxu1 %v704_v0 }
  0x5c   :  { %524 = vmatmul.mubr.msk.bf16.vlgmr.msra.gmra.mrb[0].mxu0 %vm128_vm1, %v579_v7 }
  0x5d   :  { %563 = vmatprep.mubr.msk.bf16.mxu0 %vm705_vm0, %v704_v0  ;;  %536 = vmatpush3.bf16.msra.mxu1 %v584_v10 }
  0x5e   :  { %537 = vmatprep.subr.bf16.mxu1 %v704_v0  ;;  %548 = vmatpush3.bf16.msra.mxu0 %v588_v14 }
  0x5f   :  { %549 = vmatprep.subr.bf16.mxu0 %v704_v0 }
  0x61   :  { %538 = vmatpush3.bf16.msra.mxu1 %v585_v11 }
  0x62   :  { %539 = vmatprep.subr.bf16.mxu1 %v704_v0  ;;  %550 = vmatpush3.bf16.msra.mxu0 %v589_v15 }
  0x63   :  { %551 = vmatprep.subr.bf16.mxu0 %v704_v0 }
  0x65   :  { %540 = vmatpush3.bf16.msra.mxu1 %v586_v12 }
  0x66   :  { %541 = vmatprep.subr.bf16.mxu1 %v704_v0  ;;  %552 = vmatpush3.bf16.msra.mxu0 %v590_v16 }
  0x67   :  { %553 = vmatprep.subr.bf16.mxu0 %v704_v0 }
  0x69   :  { %542 = vmatpush3.bf16.msra.mxu1 %v587_v13 }
  0x6a   :  { %554 = vmatpush3.bf16.msra.mxu0 %v591_v17 }
  0x6b   :  { %555 = vmatprep.subr.bf16.mxu0 %v704_v0 }
  0x6e   :  { %556 = vmatpush3.bf16.msra.mxu0 %v592_v18 }
  0x6f   :  { %557 = vmatprep.subr.bf16.mxu0 %v704_v0 }
  0x72   :  { %558 = vmatpush3.bf16.msra.mxu0 %v593_v19 }
  0x73   :  { %559 = vmatprep.subr.bf16.mxu0 %v704_v0 }
  0x76   :  { %560 = vmatpush3.bf16.msra.mxu0 %v594_v30 }
  0x77   :  { %561 = vmatprep.subr.bf16.mxu0 %v704_v0 }
  0x7a   :  { %562 = vmatpush3.bf16.msra.mxu0 %v595_v31 }
 0x12f   :  { %v166_v21 = vpop.f32.mrb[0].mxu0 }
 0x130   :  { %v167_v22 = vadd.f32 %v467_v20, %v166_v21  ;;  %v525_v23 = vpop.f32.mrb[1].mxu0 }
 0x131   :  { %v169_v24 = vpop.f32.mrb[2].mxu0 }
 0x132   :  { %v170_v25 = vadd.f32 %v467_v20, %v169_v24  ;;  %v526_v26 = vpop.f32.mrb[3].mxu0  ;;  %v173_v27 = vmax.f32 %v167_v22, 0.0 }
 0x134   :  { %v174_v28 = vmax.f32 %v170_v25, 0.0 }
 0x136   :  { %v175_v29 = vpack.c.bf16 %v174_v28, %v173_v27 }
 0x138   :  { %544 = vmatmul.mubr.bf16.vlgmr.msra.gmra.mrb[0].mxu1 %v175_v29 }
 0x20b   :  { %v281_v33 = vpop.f32.mrb[0].mxu1 }
 0x20c   :  { %v282_v34 = vadd.f32 %v474_v32, %v281_v33  ;;  %v545_v35 = vpop.f32.mrb[1].mxu1 }
 0x20d   :  { %v284_v36 = vpop.f32.mrb[2].mxu1 }
 0x20e   :  { %v285_v37 = vadd.f32 %v474_v32, %v284_v36  ;;  %v546_v38 = vpop.f32.mrb[3].mxu1  ;;  %v288_v39 = vmax.f32 %v282_v34, 0.0 }
 0x210   :  { %v289_v40 = vmax.f32 %v285_v37, 0.0 }
 0x212   :  { %v290_v41 = vpack.c.bf16 %v289_v40, %v288_v39 }
 0x214   :  { %564 = vmatmul.mubr.bf16.vlgmr.msra.gmra.mrb[4].mxu0 %v290_v41 }
 0x2e7   :  { %v396_v43 = vpop.f32.mrb[4].mxu0 }
 0x2e8   :  { %v397_v44 = vadd.f32 %v483_v42, %v396_v43  ;;  %v565_v45 = vpop.f32.mrb[5].mxu0 }
 0x2e9   :  { %v399_v46 = vpop.f32.mrb[6].mxu0 }
 0x2ea   :  { %403 = vmax.xlane.f32.xlu0 %v397_v44  ;;  %v566_v47 = vpop.f32.mrb[7].mxu0  ;;  %v400_v48 = vadd.f32 %v483_v42, %v399_v46 }
 0x2ee   :  { %405 = vmax.xlane.f32.xlu0 %v400_v48 }
 0x377   :  { %v404_v49 = vpop.xlane.xlu0 %403 }
 0x378   :  { %v407_v50 = vsub.f32 %v397_v44, %v404_v49 }
 0x37a   :  { %v409_v51 = vmul.f32 1.442695, %v407_v50 }
 0x37b   :  { %v406_v52 = vpop.xlane.xlu0 %405 }
 0x37c   :  { %596 = vpow2.f32 %v409_v51  ;;  %v408_v53 = vsub.f32 %v400_v48, %v406_v52 }
 0x37e   :  { %v411_v54 = vmul.f32 1.442695, %v408_v53 }
 0x380   :  { %598 = vpow2.f32 %v411_v54 }
 0x386   :  { %v597_v55 = vpop.eup %596 }
 0x387   :  { %413 = vadd.xlane.f32.xlu1 %v597_v55 }
 0x38a   :  { %v599_v56 = vpop.eup %598 }
 0x38b   :  { %415 = vadd.xlane.f32.xlu1 %v599_v56 }
 0x414   :  { %v414_v57 = vpop.xlane.xlu1 %413 }
 0x415   :  { %600 = vrcp.f32 %v414_v57 }
 0x418   :  { %v416_v58 = vpop.xlane.xlu1 %415 }
 0x419   :  { %602 = vrcp.f32 %v416_v58 }
 0x41f   :  { %v601_v59 = vpop.eup %600 }
 0x420   :  { %v418_v60 = vmul.f32 %v601_v59, %v597_v55 }
 0x422   :  { %422 = vst.msk [vmem:[#allocation9] sm:$0xff] %vm421_vm2, %v418_v60 }
 0x423   :  { %v603_v61 = vpop.eup %602 }
 0x429   :  { %v453_v62 = vld [vmem:[#allocation9] sm:$0xff] }
 0x42a   :  { %454 = vst [vmem:[%s866_s7] sm:$0xff] %v453_v62 }
 0x42b   :  { %460 = vsyncpa [#allocation3], 1 }
 0x42c   :  { %461 = vsyncpa [#allocation5], 1 }
 0x42d   :  { %462 = vsyncpa [#allocation8], 1 }

</bundles_post_ra>
